<compile_context>
chip_gen: v5e
topology: v5e:2x2
jax: 0.10.0
libtpu: 0.0.40
codegen_flags: <defaults>
</compile_context>

<pallas_src>
import jax
import jax.numpy as jnp
from jax.experimental import pallas as pl
from jax.experimental.pallas import tpu as pltpu

LANE = 128
# Candidate lane widths, widest (most lane-dense) first.
_WIDTHS = (32768, 16384, 8192, 4096, 2048, 1024, 512, 256, 128)
# ~4 MiB per grid step -> ~16 MiB live with double-buffered in+out; fits v7x's 64 MiB VMEM.
_TARGET_BLOCK_BYTES = 4 * 1024 * 1024


def _identity_kernel(x_ref, o_ref):
    # CustomModel.forward is `return x`: pure passthrough copy.
    o_ref[...] = x_ref[...]


def _sublane_pack(dtype) -> int:
    """Minimum sublane multiple for the dtype's packed vreg layout (8/16/32)."""
    return {4: 8, 2: 16, 1: 32}.get(jnp.dtype(dtype).itemsize, 8)


def _round_up(n, m):
    return -(-n // m) * m


def _copy_2d(x2d):
    """Tiled identity copy of a (rows, width) lane-dense slab."""
    rows, width = x2d.shape
    itemsize = jnp.dtype(x2d.dtype).itemsize
    sub = _sublane_pack(x2d.dtype)

    # Big lane-dense tiles (~4 MiB) instead of skinny (<=256,128) blocks:
    # fewer grid steps, full-width unmasked vst, large DMA descriptors.
    tile_rows = max(sub, (_TARGET_BLOCK_BYTES // (width * itemsize)) // sub * sub)
    tile_rows = min(rows, tile_rows)
    # Give the grid >= 2 steps when possible so v7x shards across both TensorCores
    # (no-op cost on single-TC v5e/v6e).
    if pl.cdiv(rows, tile_rows) < 2 and rows >= 2 * sub:
        tile_rows = _round_up(pl.cdiv(rows, 2), sub)
    grid = (pl.cdiv(rows, tile_rows),)

    nbytes = rows * width * itemsize
    return pl.pallas_call(
        _identity_kernel,
        out_shape=jax.ShapeDtypeStruct((rows, width), x2d.dtype),
        grid_spec=pltpu.PrefetchScalarGridSpec(
            num_scalar_prefetch=0,
            grid=grid,
            in_specs=[pl.BlockSpec((tile_rows, width), lambda i: (i, 0))],
            out_specs=pl.BlockSpec((tile_rows, width), lambda i: (i, 0)),
        ),
        compiler_params=pltpu.CompilerParams(
            dimension_semantics=("parallel",),
            vmem_limit_bytes=48 * 1024 * 1024,
        ),
        cost_estimate=pl.CostEstimate(
            flops=0, transcendentals=0, bytes_accessed=2 * nbytes),
        # Identity: let XLA alias/donate the input buffer into the output.
        input_output_aliases={0: 0},
    )(x2d)


def custom_model_forward(x):
    """CustomModel.forward(x) == x, implemented as a tiled Pallas copy kernel."""
    orig_shape = x.shape
    total = x.size
    sub = _sublane_pack(x.dtype)
    align = sub * LANE

    if total > 0 and total % align == 0:
        # Common aligned case: no wrapper-side pad / slice copies at all.
        # Pick the widest lane-dense width that keeps rows a multiple of the
        # dtype's sublane packing (128 always qualifies as a fallback).
        width = next(w for w in _WIDTHS
                     if total % w == 0 and (total // w) % sub == 0)
        out2d = _copy_2d(x.reshape(total // width, width))
        return out2d.reshape(orig_shape)

    # Rare unaligned case: pad the flat view up to a legal (rows, 512) slab,
    # copy, then slice back. Padding a few KiB beats tiny tiles.
    width = 512
    rows = _round_up(max(1, pl.cdiv(total, width)), sub)
    padded_total = rows * width
    x_flat = jnp.pad(jnp.ravel(x), (0, padded_total - total))
    out2d = _copy_2d(x_flat.reshape(rows, width))
    return out2d.reshape(-1)[:total].reshape(orig_shape)


if __name__ == "__main__":
    key = jax.random.PRNGKey(0)
    # Small NCHW-style input consistent with a generic nn.Module forward.
    x = jax.random.normal(key, (2, 4, 16, 16), dtype=jnp.float32)

    y = custom_model_forward(x)
    jax.block_until_ready(y)

    assert y.shape == x.shape and y.dtype == x.dtype
    assert bool(jnp.allclose(y, x)), "identity kernel mismatch"
    print("KERNEL_OK")
</pallas_src>

<mosaic_0001>
module attributes {stable_mosaic.version = 11 : i64} {
  func.func @_identity_kernel(%arg0: i32, %arg1: memref<8x256xf32, #tpu.memory_space<vmem>>, %arg2: memref<8x256xf32, #tpu.memory_space<vmem>>) attributes {dimension_semantics = [#tpu.dimension_semantics<parallel>], iteration_bounds = array<i64: 1>, scalar_prefetch = 0 : i64, scratch_operands = 0 : i64, tpu.core_type = #tpu.core_type<tc>, window_params = [{transform_indices = @transform_0, window_bounds = array<i64: 8, 256>}, {transform_indices = @transform_1, window_bounds = array<i64: 8, 256>}]} {
    %c0 = arith.constant 0 : index
    %c0_0 = arith.constant 0 : index
    %0 = vector.load %arg1[%c0, %c0_0] : memref<8x256xf32, #tpu.memory_space<vmem>>, vector<8x256xf32>
    %c0_1 = arith.constant 0 : index
    %c0_2 = arith.constant 0 : index
    %1 = vector.load %arg2[%c0_1, %c0_2] : memref<8x256xf32, #tpu.memory_space<vmem>>, vector<8x256xf32>
    tpu.vector_store %arg2[%c0_1, %c0_2], %0 {strides = array<i32>} : memref<8x256xf32, #tpu.memory_space<vmem>>, vector<8x256xf32>,
    return
  }
  func.func @transform_0(%arg0: i32) -> (i32, i32) {
    %c0_i32 = arith.constant 0 : i32
    %c0_i32_0 = arith.constant 0 : i32
    return %arg0, %c0_i32 : i32, i32
  }
  func.func @transform_1(%arg0: i32) -> (i32, i32) {
    %c0_i32 = arith.constant 0 : i32
    %c0_i32_0 = arith.constant 0 : i32
    return %arg0, %c0_i32 : i32, i32
  }
}

</mosaic_0001>

<bundles_post_ra>
// kernel: tpu_custom_call.1
= control target key start
LH: loop header
LB: loop body
LE: loop exit
PB: predicated region body
PF: predicated region fallthrough
CT: control target
= control target key end

     0   :  { %6 = vsyncpa [#allocation3], 0  ;;  %s116_s0 = inlined_call_operand.hbm [shape: f32[8,256], index: 0, kind: input, shape index: {}, may-alias: {0,1}]   ;;  %s117_s1 = inlined_call_operand.hbm [shape: f32[8,256], index: 1, kind: output, shape index: {}, may-alias: {0,1}]  }
   0x1   :  { %7 = vsyncpa [#allocation4], 0  ;;  %s13_s8 = sshll.u32 %s116_s0, 4  ;;  %s98_s9 = smov [#allocation2]   ;;  %s14_s8 = int_to_ptr.hbm [resolvable:$true] %s13_s8 }
   0x2   :  { %s15_s10 = sshll.u32 %s98_s9, 4  ;;  %s16_s10 = int_to_ptr.vmem [resolvable:$true] %s15_s10 }
   0x3   :  { %18 = dma.hbm_to_vmem [thread:$0]  %s14_s8, 256, %s16_s10, [#allocation3]  }
   0x4   :  { %94 = dma.done.wait [#allocation3], 256  }
   0x5   :  { %95 = vsyncadd [#allocation3], 4294967040  ;;  %s99_s11 = smov [#allocation5]   ;;  %s34_s15 = sshll.u32 %s117_s1, 4  ;;  %v23_v0 = vld [vmem:[#allocation2] sm:$0xff]  ;;  %v24_v1 = vld [vmem:[#allocation2 + $0x8] sm:$0xff]  ;;  %s35_s15 = int_to_ptr.hbm [resolvable:$true] %s34_s15 }
   0x6   :  { %s32_s12 = sshll.u32 %s99_s11, 4  ;;  %25 = vst [vmem:[#allocation5] sm:$0xff] %v23_v0  ;;  %s33_s12 = int_to_ptr.vmem [resolvable:$true] %s32_s12 }
   0x7   :  { %26 = vst [vmem:[#allocation5 + $0x8] sm:$0xff] %v24_v1 }
   0x8   :  { %37 = dma.vmem_to_hbm [thread:$0]  %s33_s12, 256, %s35_s15, [#allocation4]  }
   0x9   :  { %96 = dma.done.wait [#allocation4], 256  }
   0xa   :  { %97 = vsyncadd [#allocation4], 4294967040 }
   0xb   :  { %42 = vsyncpa [#allocation3], 1 }
   0xc   :  { %43 = vsyncpa [#allocation4], 1 }

</bundles_post_ra>
